<compile_context>
chip_gen: v7x
topology: tpu7x:2x2x1
jax: 0.10.0
libtpu: 0.0.40
codegen_flags: <defaults>
</compile_context>

<pallas_src>
import jax
import jax.numpy as jnp
from jax.experimental import pallas as pl
from jax.experimental.pallas import tpu as pltpu

# ---- model config implied by forward(): x.reshape((100, 1, 20)) ----
BATCH        = 100
IN_CHANNELS  = 1                         # forced by the reshape
N_INPUT      = 20                        # forced by the reshape
OUT_CHANNELS = 4
OUTPUT_SIZE  = 3
CONV_LEN     = N_INPUT - 1               # 19  (kernel_size=2, no padding)
FLAT         = OUT_CHANNELS * CONV_LEN   # 76
HIDDEN       = 30

# ---- padded kernel-side layout ----
LANE      = 128                          # lane-dense width for feat / output / blob
K_PAD     = 24                           # x columns: 20 data + 1 ones + 3 zero pad (8-aligned)
FLAT_PAD  = LANE                         # 76 -> 128 padded feature width
BIAS_ROW  = K_PAD + FLAT_PAD             # 152: row holding the fused fc bias
BLOB_ROWS = BIAS_ROW + 8                 # 160: pad to a multiple of 8 sublanes


def net_cnn_kernel(x_ref, wb_ref, out_ref):
    # x_ref:   (BATCH, K_PAD)       VMEM  [x | 1 | 0 0 0]
    # wb_ref:  (BLOB_ROWS, LANE)    VMEM  packed weight blob
    #   rows   0..19  : im2col conv weight (cols 0..75 used)
    #   row    20     : conv bias broadcast row
    #   rows  21..23  : zeros (K padding, matched by zero x columns)
    #   rows  24..151 : fused fc1∘fc2 weight (rows 24..99 / cols 0..2 used)
    #   row   152     : fused fc bias (cols 0..2 used)
    # out_ref: (BATCH, LANE)        VMEM  (cols 3..127 are zero by construction)
    x = x_ref[...]                                                       # (100, 24)

    # Conv1d(k=2) + bias + channel-major flatten + ReLU as one MXU pass.
    feat = jnp.dot(x, wb_ref[0:K_PAD, :],
                   preferred_element_type=jnp.float32)                  # (100, 128)
    feat = jnp.maximum(feat, 0.0)

    # fc1 ∘ fc2 fused into one MXU pass; bias add broadcasts the blob's bias row.
    y = jnp.dot(feat, wb_ref[K_PAD:K_PAD + FLAT_PAD, :],
                preferred_element_type=jnp.float32)                     # (100, 128)
    out_ref[...] = y + wb_ref[BIAS_ROW:BIAS_ROW + 1, :]


def prepare_params(params):
    """One-time host-side param transform: build the single padded weight blob."""
    cw, cb, w1, b1, w2, b2 = params

    # im2col conv weight (20, 76): column c*19+l holds cw[c,0] at row l, cw[c,1] at row l+1.
    eye_l = jnp.eye(N_INPUT, CONV_LEN, k=0, dtype=jnp.float32)
    eye_r = jnp.eye(N_INPUT, CONV_LEN, k=-1, dtype=jnp.float32)
    w_conv = jnp.concatenate(
        [cw[c, 0] * eye_l + cw[c, 1] * eye_r for c in range(OUT_CHANNELS)],
        axis=1,
    )                                                     # (20, 76)
    b_conv = jnp.repeat(cb, CONV_LEN)                     # (76,)  channel-major flat bias

    # fc1 (no activation) ∘ fc2 fusion.
    w_fused = w1.T @ w2.T                                 # (76, 3)
    b_fused = b1 @ w2.T + b2                              # (3,)

    blob = jnp.zeros((BLOB_ROWS, LANE), jnp.float32)
    blob = blob.at[0:N_INPUT, 0:FLAT].set(w_conv)                     # conv weight
    blob = blob.at[N_INPUT, 0:FLAT].set(b_conv)                       # conv bias row
    blob = blob.at[K_PAD:K_PAD + FLAT, 0:OUTPUT_SIZE].set(w_fused)    # fused fc weight
    blob = blob.at[BIAS_ROW, 0:OUTPUT_SIZE].set(b_fused)              # fused fc bias
    return blob


def net_cnn_forward(x, weight_blob):
    # forward() semantics: x.reshape((100, 1, 20)); squeeze the size-1 channel,
    # append a ones column (conv bias) and zero padding to reach K_PAD lanes.
    xb = x.reshape(BATCH, N_INPUT)
    if xb.dtype != jnp.float32:
        xb = xb.astype(jnp.float32)
    x_aug = jnp.concatenate(
        [xb,
         jnp.ones((BATCH, 1), jnp.float32),
         jnp.zeros((BATCH, K_PAD - N_INPUT - 1), jnp.float32)],
        axis=1,
    )                                                                 # (100, 24)

    y = pl.pallas_call(
        net_cnn_kernel,
        out_shape=jax.ShapeDtypeStruct((BATCH, LANE), jnp.float32),
        in_specs=[
            pl.BlockSpec(memory_space=pltpu.MemorySpace.VMEM),   # x_aug
            pl.BlockSpec(memory_space=pltpu.MemorySpace.VMEM),   # packed weight blob
        ],
        out_specs=pl.BlockSpec(memory_space=pltpu.MemorySpace.VMEM),
    )(x_aug, weight_blob)

    # Slice the real 3 outputs, then x.unsqueeze(-1) -> (100, OUTPUT_SIZE, 1).
    return y[:, :OUTPUT_SIZE, None]


def init_params(key):
    """Deterministic init mimicking PyTorch's default uniform(-1/sqrt(fan_in), ...)."""
    k = jax.random.split(key, 6)
    bound_conv = 1.0 / jnp.sqrt(IN_CHANNELS * 2.0)
    bound_fc1 = 1.0 / jnp.sqrt(float(FLAT))
    bound_fc2 = 1.0 / jnp.sqrt(float(HIDDEN))
    cw = jax.random.uniform(k[0], (OUT_CHANNELS, 2), jnp.float32, -bound_conv, bound_conv)
    cb = jax.random.uniform(k[1], (OUT_CHANNELS,), jnp.float32, -bound_conv, bound_conv)
    w1 = jax.random.uniform(k[2], (HIDDEN, FLAT), jnp.float32, -bound_fc1, bound_fc1)
    b1 = jax.random.uniform(k[3], (HIDDEN,), jnp.float32, -bound_fc1, bound_fc1)
    w2 = jax.random.uniform(k[4], (OUTPUT_SIZE, HIDDEN), jnp.float32, -bound_fc2, bound_fc2)
    b2 = jax.random.uniform(k[5], (OUTPUT_SIZE,), jnp.float32, -bound_fc2, bound_fc2)
    return cw, cb, w1, b1, w2, b2


def ref_forward(x, params):
    """Pure-JAX reference matching the PyTorch forward exactly (unfused)."""
    cw, cb, w1, b1, w2, b2 = params
    xb = x.reshape(BATCH, IN_CHANNELS, N_INPUT)
    xl = xb[:, 0, :-1]
    xr = xb[:, 0, 1:]
    conv = (cw[None, :, 0:1] * xl[:, None, :]
            + cw[None, :, 1:2] * xr[:, None, :]
            + cb.reshape(1, -1, 1))                       # (B, C, 19)
    conv = jnp.maximum(conv, 0.0)
    feat = conv.reshape(BATCH, -1)                        # torch.flatten(x, 1)
    h = feat @ w1.T + b1
    y = h @ w2.T + b2
    return y[:, :, None]


if __name__ == "__main__":
    key = jax.random.PRNGKey(0)
    kx, kp = jax.random.split(key)
    # input: any tensor with 100*1*20 elements; the forward() reshape forces this size
    x = jax.random.normal(kx, (BATCH, IN_CHANNELS, N_INPUT), jnp.float32)
    params = init_params(kp)
    weight_blob = prepare_params(params)     # one-time weight transform, not in hot path

    out = net_cnn_forward(x, weight_blob)
    out = jax.block_until_ready(out)

    ref = ref_forward(x, params)
    assert out.shape == (BATCH, OUTPUT_SIZE, 1), out.shape
    # fc1/fc2 fusion changes rounding order slightly; stay in f32 with a modest tolerance.
    assert jnp.allclose(out, ref, atol=1e-4, rtol=1e-4), "mismatch vs reference"
    print("KERNEL_OK")
</pallas_src>

<mosaic_0001>
module attributes {stable_mosaic.version = 11 : i64} {
  func.func @net_cnn_kernel(%arg0: memref<100x24xf32, #tpu.memory_space<vmem>>, %arg1: memref<160x128xf32, #tpu.memory_space<vmem>>, %arg2: memref<100x128xf32, #tpu.memory_space<vmem>>) attributes {dimension_semantics = [], scalar_prefetch = 0 : i64, scratch_operands = 0 : i64, tpu.core_type = #tpu.core_type<tc>} {
    %c0 = arith.constant 0 : index
    %c0_0 = arith.constant 0 : index
    %0 = vector.load %arg0[%c0, %c0_0] : memref<100x24xf32, #tpu.memory_space<vmem>>, vector<100x24xf32>
    %c0_1 = arith.constant 0 : index
    %c0_2 = arith.constant 0 : index
    %1 = vector.load %arg1[%c0_1, %c0_2] : memref<160x128xf32, #tpu.memory_space<vmem>>, vector<24x128xf32>
    %cst = arith.constant dense<0.000000e+00> : vector<100x128xf32>
    %2 = tpu.matmul %0, %1, %cst {dimension_numbers = #tpu.dot_dimension_numbers<[1], [0], [0], [1], [0, 0, 1, 1], [], []>} : vector<100x24xf32>, vector<24x128xf32>, vector<100x128xf32> -> vector<100x128xf32>
    %cst_3 = arith.constant 0.000000e+00 : f32
    %3 = vector.broadcast %cst_3 : f32 to vector<100x128xf32>
    %4 = arith.maximumf %2, %3 : vector<100x128xf32>
    %c24 = arith.constant 24 : index
    %c0_4 = arith.constant 0 : index
    %5 = vector.load %arg1[%c24, %c0_4] : memref<160x128xf32, #tpu.memory_space<vmem>>, vector<128x128xf32>
    %cst_5 = arith.constant dense<0.000000e+00> : vector<100x128xf32>
    %6 = tpu.matmul %4, %5, %cst_5 {dimension_numbers = #tpu.dot_dimension_numbers<[1], [0], [0], [1], [0, 0, 1, 1], [], []>} : vector<100x128xf32>, vector<128x128xf32>, vector<100x128xf32> -> vector<100x128xf32>
    %c152 = arith.constant 152 : index
    %c0_6 = arith.constant 0 : index
    %7 = vector.load %arg1[%c152, %c0_6] : memref<160x128xf32, #tpu.memory_space<vmem>>, vector<1x128xf32>
    %8 = vector.broadcast %7 : vector<1x128xf32> to vector<100x128xf32>
    %9 = arith.addf %6, %8 : vector<100x128xf32>
    %c0_7 = arith.constant 0 : index
    %c0_8 = arith.constant 0 : index
    %10 = vector.load %arg2[%c0_7, %c0_8] : memref<100x128xf32, #tpu.memory_space<vmem>>, vector<100x128xf32>
    tpu.vector_store %arg2[%c0_7, %c0_8], %9 {strides = array<i32>} : memref<100x128xf32, #tpu.memory_space<vmem>>, vector<100x128xf32>,
    return
  }
}

</mosaic_0001>

<bundles_post_ra>
// kernel: tpu_custom_call.1
= control target key start
LH: loop header
LB: loop body
LE: loop exit
PB: predicated region body
PF: predicated region fallthrough
CT: control target
= control target key end

     0   :  { %7 = vsyncpa [#allocation3], 0  ;;  %s853_s0 = inlined_call_operand.vmem [shape: f32[100,24], index: 0, kind: input, shape index: {}]   ;;  %s854_s1 = inlined_call_operand.hbm [shape: f32[160,128], index: 1, kind: input, shape index: {}]   ;;  %s855_s2 = inlined_call_operand.hbm [shape: f32[100,128], index: 2, kind: output, shape index: {}]  }
   0x1   :  { %8 = vsyncpa [#allocation4], 0  ;;  %s679_s9 = smov [#allocation2]   ;;  %s631_s13 = scalar_lea.hbm %s854_s1, 2560 }
   0x2   :  { %s16_s10 = sshll.u32 %s679_s9, 4  ;;  %p632_p0 = scmp.ne.s32.totalorder %s854_s1, %s631_s13  ;;  %s17_s10 = int_to_ptr.vmem [resolvable:$true] %s16_s10 }
   0x3   :  { %p635_p1 = scmp.lt.u32.totalorder %s631_s13, %s854_s1 }
   0x5   :  { %p637_p2 = pnand %p635_p1, %p632_p0 }
   0x7   :  { %640 = shalt.err (!%p637_p2)
}
   0x8   :  { %s641_s18 = scalar_lea.vmem %s17_s10, 2560  ;;  %p646_p4 = scmp.lt.s32.totalorder %s17_s10, %s17_s10 }
   0x9   :  { %p642_p3 = scmp.ne.s32.totalorder %s17_s10, %s641_s18  ;;  %p647_p5 = scmp.lt.s32.totalorder %s641_s18, %s641_s18 }
   0xb   :  { %p648_p6 = por %p647_p5, %p646_p4 }
   0xd   :  { %p649_p7 = pnand %p648_p6, %p642_p3 }
   0xf   :  { %652 = shalt.err (!%p649_p7)
}
  0x10   :  { %s680_s19 = smov 128   ;;  %s681_s20 = smov 8  }
  0x11   :  { %22 = dma.hbm_to_vmem [thread:$0]  %s854_s1, 2560, %s17_s10, [#allocation3], %s680_s19, %s680_s19, %s681_s20  }
  0x12   :  { %675 = dma.done.wait [#allocation3], 2560  }
  0x13   :  { %676 = vsyncadd [#allocation3], 4294964736  ;;  %v682_v0 = vmov 0.0|0.0   ;;  %vm683_vm0 = vmmov 0   ;;  %v684_v1 = vmov 0.0   ;;  %v39_v2 = vld [vmem:[#allocation2] sm:$0xff] }
  0x14   :  { %581 = vmatprep.subr.bf16.mxu0 %v682_v0  ;;  %471 = vmatprep.mubr.msk.f32.mxu0 %vm683_vm0, %v684_v1  ;;  %v40_v3 = vld [vmem:[#allocation2 + $0x8] sm:$0xff]  ;;  %v41_v5 = vld [vmem:[#allocation2 + $0x10] sm:$0xff]  ;;  %v26_v6 = vld [vmem:[%s853_s0] sm:$0xff]  ;;  %vm42_vm1 = vcmask 195584  }
  0x15   :  { %608 = vmatprep.subr.bf16.mxu1 %v682_v0  ;;  %551 = vmatprep.mubr.msk.f32.mxu1 %vm683_vm0, %v684_v1  ;;  %v582_v4 = vpack.c.bf16 %v40_v3, %v39_v2  ;;  %v225_v7 = vld [vmem:[#allocation2 + $0x18] sm:$0xff]  ;;  %v226_v8 = vld [vmem:[#allocation2 + $0x20] sm:$0xff]  ;;  %v227_v10 = vld [vmem:[#allocation2 + $0x28] sm:$0xff] }
  0x16   :  { %v585_v9 = vpack.c.bf16 %v226_v8, %v225_v7  ;;  %v228_v11 = vld [vmem:[#allocation2 + $0x30] sm:$0xff]  ;;  %v27_v12 = vld [vmem:[%s853_s0 + $0x8] sm:$0xff]  ;;  %v229_v14 = vld [vmem:[#allocation2 + $0x38] sm:$0xff] }
  0x17   :  { %583 = vmatpush3.bf16.msra.mxu0 %v582_v4  ;;  %v588_v13 = vpack.c.bf16 %v228_v11, %v227_v10  ;;  %v230_v15 = vld [vmem:[#allocation2 + $0x40] sm:$0xff]  ;;  %v28_v16 = vld [vmem:[%s853_s0 + $0x10] sm:$0xff]  ;;  %v231_v18 = vld [vmem:[#allocation2 + $0x48] sm:$0xff] }
  0x18   :  { %469 = vmatprep.subr.mxu0 %v684_v1  ;;  %616 = vmatpush3.bf16.msra.mxu1 %v585_v9  ;;  %v591_v17 = vpack.c.bf16 %v230_v15, %v229_v14  ;;  %v232_v19 = vld [vmem:[#allocation2 + $0x50] sm:$0xff]  ;;  %v29_v20 = vld [vmem:[%s853_s0 + $0x18] sm:$0xff]  ;;  %v234_v23 = vld [vmem:[#allocation2 + $0x60] sm:$0xff] }
  0x19   :  { %609 = vmatprep.subr.bf16.mxu1 %v682_v0  ;;  %v594_v21 = vpack.c.bf16 %v232_v19, %v231_v18  ;;  %v233_v22 = vld [vmem:[#allocation2 + $0x58] sm:$0xff]  ;;  %v30_v24 = vld [vmem:[%s853_s0 + $0x20] sm:$0xff]  ;;  %v235_v26 = vld [vmem:[#allocation2 + $0x68] sm:$0xff] }
  0x1a   :  { %v597_v25 = vpack.c.bf16 %v234_v23, %v233_v22  ;;  %v236_v27 = vld [vmem:[#allocation2 + $0x70] sm:$0xff]  ;;  %v31_v28 = vld [vmem:[%s853_s0 + $0x28] sm:$0xff]  ;;  %v237_v30 = vld [vmem:[#allocation2 + $0x78] sm:$0xff] }
  0x1b   :  { %470 = vmatpush3.msra.mxu0 %v41_v5  ;;  %v600_v29 = vpack.c.bf16 %v236_v27, %v235_v26  ;;  %v238_v31 = vld [vmem:[#allocation2 + $0x80] sm:$0xff]  ;;  %v32_v32 = vld [vmem:[%s853_s0 + $0x30] sm:$0xff]  ;;  %v33_v34 = vld [vmem:[%s853_s0 + $0x38] sm:$0xff] }
  0x1c   :  { %472 = vmatmul.mubr.msk.f32.vlgmr.msra.gmra.mrb[0].mxu0 %vm42_vm1, %v26_v6  ;;  %584 = vmatprep.subr.bf16.mxu0 %v682_v0  ;;  %v603_v33 = vpack.c.bf16 %v238_v31, %v237_v30  ;;  %v34_v35 = vld [vmem:[%s853_s0 + $0x40] sm:$0xff]  ;;  %v35_v36 = vld [vmem:[%s853_s0 + $0x48] sm:$0xff]  ;;  %v36_v37 = vld [vmem:[%s853_s0 + $0x50] sm:$0xff] }
  0x1d   :  { %474 = vmatprep.mubr.msk.f32.mxu0 %vm683_vm0, %v684_v1  ;;  %586 = vmatpush3.bf16.msra.mxu0 %v585_v9  ;;  %v37_v38 = vld [vmem:[%s853_s0 + $0x58] sm:$0xff]  ;;  %v38_v39 = vld [vmem:[%s853_s0 + $0x60] sm:$0xf]  ;;  %v239_v40 = vld [vmem:[#allocation2 + $0x88] sm:$0xff]  ;;  %s685_s0 = smov [#allocation5]  }
  0x1e   :  { %587 = vmatprep.subr.bf16.mxu0 %v682_v0  ;;  %617 = vmatpush3.bf16.msra.mxu1 %v588_v13  ;;  %v240_v41 = vld [vmem:[#allocation2 + $0x90] sm:$0xff]  ;;  %v419_v19 = vld [vmem:[#allocation2 + $0x98] ss:$0 sm:$0xff]  ;;  %s394_s22 = sshll.u32 %s685_s0, 4  ;;  %s395_s22 = int_to_ptr.vmem [resolvable:$true] %s394_s22 }
  0x1f   :  { %610 = vmatprep.subr.bf16.mxu1 %v682_v0  ;;  %v606_v42 = vpack.c.bf16 %v240_v41, %v239_v40  ;;  %s653_s1 = scalar_lea.vmem %s395_s22, 1664  ;;  %p658_p9 = scmp.lt.s32.totalorder %s395_s22, %s395_s22 }
  0x20   :  { %475 = vmatmul.mubr.msk.f32.gmra.mrb[2].mxu0 %vm42_vm1, %v27_v12  ;;  %p654_p8 = scmp.ne.s32.totalorder %s395_s22, %s653_s1  ;;  %p659_p10 = scmp.lt.s32.totalorder %s653_s1, %s653_s1 }
  0x21   :  { %477 = vmatprep.mubr.msk.f32.mxu0 %vm683_vm0, %v684_v1  ;;  %589 = vmatpush3.bf16.msra.mxu0 %v588_v13 }
  0x22   :  { %590 = vmatprep.subr.bf16.mxu0 %v682_v0  ;;  %618 = vmatpush3.bf16.msra.mxu1 %v591_v17  ;;  %p660_p11 = por %p659_p10, %p658_p9 }
  0x23   :  { %611 = vmatprep.subr.bf16.mxu1 %v682_v0 }
  0x24   :  { %478 = vmatmul.mubr.msk.f32.gmra.mrb[4].mxu0 %vm42_vm1, %v28_v16  ;;  %p661_p12 = pnand %p660_p11, %p654_p8 }
  0x25   :  { %480 = vmatprep.mubr.msk.f32.mxu0 %vm683_vm0, %v684_v1  ;;  %592 = vmatpush3.bf16.msra.mxu0 %v591_v17 }
  0x26   :  { %593 = vmatprep.subr.bf16.mxu0 %v682_v0  ;;  %619 = vmatpush3.bf16.msra.mxu1 %v594_v21 }
  0x27   :  { %612 = vmatprep.subr.bf16.mxu1 %v682_v0 }
  0x28   :  { %481 = vmatmul.mubr.msk.f32.gmra.mrb[6].mxu0 %vm42_vm1, %v29_v20 }
  0x29   :  { %483 = vmatprep.mubr.msk.f32.mxu0 %vm683_vm0, %v684_v1  ;;  %595 = vmatpush3.bf16.msra.mxu0 %v594_v21 }
  0x2a   :  { %596 = vmatprep.subr.bf16.mxu0 %v682_v0  ;;  %620 = vmatpush3.bf16.msra.mxu1 %v597_v25 }
  0x2b   :  { %613 = vmatprep.subr.bf16.mxu1 %v682_v0 }
  0x2c   :  { %484 = vmatmul.mubr.msk.f32.gmra.mrb[8].mxu0 %vm42_vm1, %v30_v24 }
  0x2d   :  { %486 = vmatprep.mubr.msk.f32.mxu0 %vm683_vm0, %v684_v1  ;;  %598 = vmatpush3.bf16.msra.mxu0 %v597_v25 }
  0x2e   :  { %599 = vmatprep.subr.bf16.mxu0 %v682_v0  ;;  %621 = vmatpush3.bf16.msra.mxu1 %v600_v29 }
  0x2f   :  { %614 = vmatprep.subr.bf16.mxu1 %v682_v0 }
  0x30   :  { %487 = vmatmul.mubr.msk.f32.gmra.mrb[10].mxu0 %vm42_vm1, %v31_v28 }
  0x31   :  { %489 = vmatprep.mubr.msk.f32.mxu0 %vm683_vm0, %v684_v1  ;;  %601 = vmatpush3.bf16.msra.mxu0 %v600_v29 }
  0x32   :  { %602 = vmatprep.subr.bf16.mxu0 %v682_v0  ;;  %622 = vmatpush3.bf16.msra.mxu1 %v603_v33 }
  0x33   :  { %615 = vmatprep.subr.bf16.mxu1 %v682_v0 }
  0x34   :  { %490 = vmatmul.mubr.msk.f32.gmra.mrb[12].mxu0 %vm42_vm1, %v32_v32 }
  0x35   :  { %492 = vmatprep.mubr.msk.f32.mxu0 %vm683_vm0, %v684_v1  ;;  %604 = vmatpush3.bf16.msra.mxu0 %v603_v33 }
  0x36   :  { %605 = vmatprep.subr.bf16.mxu0 %v682_v0  ;;  %623 = vmatpush3.bf16.msra.mxu1 %v606_v42 }
  0x38   :  { %493 = vmatmul.mubr.msk.f32.gmra.mrb[14].mxu0 %vm42_vm1, %v33_v34 }
  0x39   :  { %495 = vmatprep.mubr.msk.f32.mxu0 %vm683_vm0, %v684_v1  ;;  %607 = vmatpush3.bf16.msra.mxu0 %v606_v42 }
  0x3c   :  { %496 = vmatmul.mubr.msk.f32.gmra.mrb[16].mxu0 %vm42_vm1, %v34_v35 }
  0x3d   :  { %498 = vmatprep.mubr.msk.f32.mxu0 %vm683_vm0, %v684_v1 }
  0x40   :  { %499 = vmatmul.mubr.msk.f32.gmra.mrb[18].mxu0 %vm42_vm1, %v35_v36 }
  0x41   :  { %501 = vmatprep.mubr.msk.f32.mxu0 %vm683_vm0, %v684_v1 }
  0x44   :  { %502 = vmatmul.mubr.msk.f32.gmra.mrb[20].mxu0 %vm42_vm1, %v36_v37 }
  0x45   :  { %504 = vmatprep.mubr.msk.f32.mxu0 %vm683_vm0, %v684_v1 }
  0x48   :  { %505 = vmatmul.mubr.msk.f32.gmra.mrb[22].mxu0 %vm42_vm1, %v37_v38 }
  0x49   :  { %507 = vmatprep.mubr.msk.f32.mxu0 %vm683_vm0, %v684_v1 }
  0x4c   :  { %508 = vmatmul.mubr.msk.f32.gmra.mrb[24].mxu0 %vm42_vm1, %v38_v39 }
  0x4d   :  { %542 = vmatprep.mubr.msk.f32.mxu0 %vm683_vm0, %v684_v1 }
  0xef   :  { %v148_v43 = vpop.f32.mrb[0].mxu0 }
  0xf0   :  { %v212_v44 = vmax.f32 %v148_v43, 0.0  ;;  %v473_v45 = vpop.f32.mrb[1].mxu0 }
  0xf2   :  { %543 = vmatmul.mubr.f32.vlgmr.msra.gmra.mrb[26].mxu0 %v212_v44 }
  0xf3   :  { %v153_v46 = vpop.f32.mrb[2].mxu0  ;;  %545 = vmatprep.mubr.msk.f32.mxu0 %vm683_vm0, %v684_v1 }
  0xf4   :  { %v213_v47 = vmax.f32 %v153_v46, 0.0  ;;  %v476_v48 = vpop.f32.mrb[3].mxu0 }
  0xf6   :  { %546 = vmatmul.mubr.f32.gmra.mrb[28].mxu0 %v213_v47 }
  0xf7   :  { %v158_v49 = vpop.f32.mrb[4].mxu0  ;;  %548 = vmatprep.mubr.msk.f32.mxu0 %vm683_vm0, %v684_v1 }
  0xf8   :  { %v214_v50 = vmax.f32 %v158_v49, 0.0  ;;  %v479_v51 = vpop.f32.mrb[5].mxu0 }
  0xfa   :  { %549 = vmatmul.mubr.f32.gmra.mrb[30].mxu0 %v214_v50 }
  0xfb   :  { %v163_v52 = vpop.f32.mrb[6].mxu0 }
  0xfc   :  { %v215_v53 = vmax.f32 %v163_v52, 0.0  ;;  %v482_v54 = vpop.f32.mrb[7].mxu0 }
  0xfe   :  { %552 = vmatmul.mubr.f32.vlgmr.msra.gmra.mrb[0].mxu1 %v215_v53 }
  0xff   :  { %v168_v55 = vpop.f32.mrb[8].mxu0  ;;  %554 = vmatprep.mubr.msk.f32.mxu1 %vm683_vm0, %v684_v1 }
 0x100   :  { %v216_v56 = vmax.f32 %v168_v55, 0.0  ;;  %v485_v57 = vpop.f32.mrb[9].mxu0 }
 0x102   :  { %555 = vmatmul.mubr.f32.gmra.mrb[2].mxu1 %v216_v56 }
 0x103   :  { %v173_v58 = vpop.f32.mrb[10].mxu0  ;;  %557 = vmatprep.mubr.msk.f32.mxu1 %vm683_vm0, %v684_v1 }
 0x104   :  { %v217_v59 = vmax.f32 %v173_v58, 0.0  ;;  %v488_v60 = vpop.f32.mrb[11].mxu0 }
 0x106   :  { %558 = vmatmul.mubr.f32.gmra.mrb[4].mxu1 %v217_v59 }
 0x107   :  { %v178_v61 = vpop.f32.mrb[12].mxu0  ;;  %560 = vmatprep.mubr.msk.f32.mxu1 %vm683_vm0, %v684_v1 }
 0x108   :  { %v218_v62 = vmax.f32 %v178_v61, 0.0  ;;  %v491_v63 = vpop.f32.mrb[13].mxu0 }
 0x10a   :  { %561 = vmatmul.mubr.f32.gmra.mrb[6].mxu1 %v218_v62 }
 0x10b   :  { %v183_v0 = vpop.f32.mrb[14].mxu0  ;;  %563 = vmatprep.mubr.msk.f32.mxu1 %vm683_vm0, %v684_v1 }
 0x10c   :  { %v219_v2 = vmax.f32 %v183_v0, 0.0  ;;  %v494_v3 = vpop.f32.mrb[15].mxu0 }
 0x10e   :  { %564 = vmatmul.mubr.f32.gmra.mrb[8].mxu1 %v219_v2 }
 0x10f   :  { %v188_v4 = vpop.f32.mrb[16].mxu0  ;;  %566 = vmatprep.mubr.msk.f32.mxu1 %vm683_vm0, %v684_v1 }
 0x110   :  { %v220_v5 = vmax.f32 %v188_v4, 0.0  ;;  %v497_v6 = vpop.f32.mrb[17].mxu0 }
 0x112   :  { %567 = vmatmul.mubr.f32.gmra.mrb[10].mxu1 %v220_v5 }
 0x113   :  { %v193_v7 = vpop.f32.mrb[18].mxu0  ;;  %569 = vmatprep.mubr.msk.f32.mxu1 %vm683_vm0, %v684_v1 }
 0x114   :  { %v221_v8 = vmax.f32 %v193_v7, 0.0  ;;  %v500_v9 = vpop.f32.mrb[19].mxu0 }
 0x116   :  { %570 = vmatmul.mubr.f32.gmra.mrb[12].mxu1 %v221_v8 }
 0x117   :  { %v198_v10 = vpop.f32.mrb[20].mxu0  ;;  %572 = vmatprep.mubr.msk.f32.mxu1 %vm683_vm0, %v684_v1 }
 0x118   :  { %v222_v11 = vmax.f32 %v198_v10, 0.0  ;;  %v503_v12 = vpop.f32.mrb[21].mxu0 }
 0x11a   :  { %573 = vmatmul.mubr.f32.gmra.mrb[14].mxu1 %v222_v11 }
 0x11b   :  { %v203_v13 = vpop.f32.mrb[22].mxu0  ;;  %575 = vmatprep.mubr.msk.f32.mxu1 %vm683_vm0, %v684_v1 }
 0x11c   :  { %v223_v14 = vmax.f32 %v203_v13, 0.0  ;;  %v506_v15 = vpop.f32.mrb[23].mxu0 }
 0x11e   :  { %576 = vmatmul.mubr.f32.gmra.mrb[16].mxu1 %v223_v14 }
 0x11f   :  { %v208_v16 = vpop.f32.mrb[24].mxu0  ;;  %578 = vmatprep.mubr.msk.f32.mxu1 %vm683_vm0, %v684_v1 }
 0x120   :  { %v224_v17 = vmax.f32 %v208_v16, 0.0  ;;  %v509_v18 = vpop.f32.mrb[25].mxu0 }
 0x122   :  { %579 = vmatmul.mubr.f32.gmra.mrb[18].mxu1 %v224_v17 }
 0x1c5   :  { %v312_v20 = vpop.f32.mrb[26].mxu0 }
 0x1c6   :  { %v313_v21 = vadd.f32 %v419_v19, %v312_v20  ;;  %v544_v22 = vpop.f32.mrb[27].mxu0 }
 0x1c8   :  { %376 = vst [vmem:[#allocation5] sm:$0xff] %v313_v21 }
 0x1c9   :  { %v317_v23 = vpop.f32.mrb[28].mxu0 }
 0x1ca   :  { %v318_v24 = vadd.f32 %v419_v19, %v317_v23  ;;  %v547_v25 = vpop.f32.mrb[29].mxu0 }
 0x1cc   :  { %377 = vst [vmem:[#allocation5 + $0x8] sm:$0xff] %v318_v24 }
 0x1cd   :  { %v322_v26 = vpop.f32.mrb[30].mxu0 }
 0x1ce   :  { %v323_v27 = vadd.f32 %v419_v19, %v322_v26  ;;  %v550_v28 = vpop.f32.mrb[31].mxu0 }
 0x1d0   :  { %378 = vst [vmem:[#allocation5 + $0x10] sm:$0xff] %v323_v27 }
 0x1d1   :  { %v327_v29 = vpop.f32.mrb[0].mxu1 }
 0x1d2   :  { %v328_v30 = vadd.f32 %v419_v19, %v327_v29  ;;  %v553_v31 = vpop.f32.mrb[1].mxu1 }
 0x1d4   :  { %379 = vst [vmem:[#allocation5 + $0x18] sm:$0xff] %v328_v30 }
 0x1d5   :  { %v332_v1 = vpop.f32.mrb[2].mxu1 }
 0x1d6   :  { %v333_v32 = vadd.f32 %v419_v19, %v332_v1  ;;  %v556_v33 = vpop.f32.mrb[3].mxu1 }
 0x1d8   :  { %380 = vst [vmem:[#allocation5 + $0x20] sm:$0xff] %v333_v32 }
 0x1d9   :  { %v337_v34 = vpop.f32.mrb[4].mxu1 }
 0x1da   :  { %v338_v35 = vadd.f32 %v419_v19, %v337_v34  ;;  %v559_v36 = vpop.f32.mrb[5].mxu1 }
 0x1dc   :  { %381 = vst [vmem:[#allocation5 + $0x28] sm:$0xff] %v338_v35 }
 0x1dd   :  { %v342_v37 = vpop.f32.mrb[6].mxu1 }
 0x1de   :  { %v343_v38 = vadd.f32 %v419_v19, %v342_v37  ;;  %v562_v39 = vpop.f32.mrb[7].mxu1 }
 0x1e0   :  { %382 = vst [vmem:[#allocation5 + $0x30] sm:$0xff] %v343_v38 }
 0x1e1   :  { %v347_v40 = vpop.f32.mrb[8].mxu1 }
 0x1e2   :  { %v348_v41 = vadd.f32 %v419_v19, %v347_v40  ;;  %v565_v42 = vpop.f32.mrb[9].mxu1 }
 0x1e4   :  { %383 = vst [vmem:[#allocation5 + $0x38] sm:$0xff] %v348_v41 }
 0x1e5   :  { %v352_v43 = vpop.f32.mrb[10].mxu1 }
 0x1e6   :  { %v353_v44 = vadd.f32 %v419_v19, %v352_v43  ;;  %v568_v45 = vpop.f32.mrb[11].mxu1 }
 0x1e8   :  { %384 = vst [vmem:[#allocation5 + $0x40] sm:$0xff] %v353_v44 }
 0x1e9   :  { %v357_v46 = vpop.f32.mrb[12].mxu1 }
 0x1ea   :  { %v358_v47 = vadd.f32 %v419_v19, %v357_v46  ;;  %v571_v48 = vpop.f32.mrb[13].mxu1 }
 0x1ec   :  { %385 = vst [vmem:[#allocation5 + $0x48] sm:$0xff] %v358_v47 }
 0x1ed   :  { %v362_v49 = vpop.f32.mrb[14].mxu1 }
 0x1ee   :  { %v363_v50 = vadd.f32 %v419_v19, %v362_v49  ;;  %v574_v51 = vpop.f32.mrb[15].mxu1 }
 0x1f0   :  { %386 = vst [vmem:[#allocation5 + $0x50] sm:$0xff] %v363_v50 }
 0x1f1   :  { %v367_v52 = vpop.f32.mrb[16].mxu1 }
 0x1f2   :  { %v368_v53 = vadd.f32 %v419_v19, %v367_v52  ;;  %v577_v54 = vpop.f32.mrb[17].mxu1 }
 0x1f4   :  { %387 = vst [vmem:[#allocation5 + $0x58] sm:$0xff] %v368_v53 }
 0x1f5   :  { %v372_v55 = vpop.f32.mrb[18].mxu1 }
 0x1f6   :  { %v373_v56 = vadd.f32 %v419_v19, %v372_v55  ;;  %v580_v57 = vpop.f32.mrb[19].mxu1 }
 0x1f8   :  { %388 = vst [vmem:[#allocation5 + $0x60] sm:$0xf] %v373_v56 }
 0x1f9   :  { %664 = shalt.err (!%p661_p12)
}
 0x1fa   :  { %s665_s25 = scalar_lea.hbm %s855_s2, 1664 }
 0x1fb   :  { %p666_p13 = scmp.ne.s32.totalorder %s855_s2, %s665_s25  ;;  %p669_p0 = scmp.lt.u32.totalorder %s665_s25, %s855_s2 }
 0x1fd   :  { %p671_p1 = pnand %p669_p0, %p666_p13 }
 0x1ff   :  { %674 = shalt.err (!%p671_p1)
}
 0x200   :  { %400 = dma.vmem_to_hbm [thread:$0]  %s395_s22, 1664, %s855_s2, [#allocation4], %s680_s19, %s680_s19, %s681_s20  }
 0x201   :  { %677 = dma.done.wait [#allocation4], 1664  }
 0x202   :  { %678 = vsyncadd [#allocation4], 4294965632 }
 0x203   :  { %404 = vsyncpa [#allocation3], 1 }
 0x204   :  { %405 = vsyncpa [#allocation4], 1 }

</bundles_post_ra>
